<compile_context>
chip_gen: v7x
topology: tpu7x:2x2x1
jax: 0.10.0
libtpu: 0.0.40
codegen_flags: <defaults>
</compile_context>

<pallas_src>
import functools

import jax
import jax.numpy as jnp
import numpy as np
from jax.experimental import pallas as pl
from jax.experimental.pallas import tpu as pltpu


# ----------------------------------------------------------------------------
# Tile-size helper: largest t <= target with t % align == 0 and dim % t == 0,
# otherwise the full dim (full-extent blocks always satisfy the TPU constraint).
# ----------------------------------------------------------------------------
def _pick_tile(dim, target, align):
    if dim <= target:
        return dim
    t = (target // align) * align
    while t >= align:
        if dim % t == 0:
            return t
        t -= align
    return dim


# ----------------------------------------------------------------------------
# Tiled linear:  out = x @ w_t + b      (x: (M,K), w_t: (K,N) pre-transposed)
# ----------------------------------------------------------------------------
def _linear_kernel(x_ref, w_ref, b_ref, o_ref, acc_ref, *, compute_dtype):
    k_step = pl.program_id(2)

    @pl.when(k_step == 0)
    def _():
        acc_ref[...] = jnp.zeros_like(acc_ref)

    acc_ref[...] += jnp.dot(
        x_ref[...].astype(compute_dtype),
        w_ref[...].astype(compute_dtype),
        preferred_element_type=jnp.float32,
    )

    @pl.when(k_step == pl.num_programs(2) - 1)
    def _():
        o_ref[...] = (acc_ref[...] + b_ref[...].astype(jnp.float32)).astype(o_ref.dtype)


def pallas_linear(x, w_t, b, *, compute_dtype=jnp.float32,
                  tm_target=256, tn_target=256, tk_target=512):
    """x: (M, K); w_t: (K, N) pre-transposed; b: (1, N).  Returns (M, N)."""
    m, kdim = x.shape
    n = w_t.shape[1]
    bm = _pick_tile(m, tm_target, 8)
    bn = _pick_tile(n, tn_target, 128)
    bk = _pick_tile(kdim, tk_target, 128)
    grid = (m // bm, n // bn, kdim // bk)
    kern = functools.partial(_linear_kernel, compute_dtype=compute_dtype)
    return pl.pallas_call(
        kern,
        out_shape=jax.ShapeDtypeStruct((m, n), x.dtype),
        grid_spec=pltpu.PrefetchScalarGridSpec(
            num_scalar_prefetch=0,
            grid=grid,
            in_specs=[
                pl.BlockSpec((bm, bk), lambda i, j, kk: (i, kk)),
                pl.BlockSpec((bk, bn), lambda i, j, kk: (kk, j)),
                pl.BlockSpec((1, bn), lambda i, j, kk: (0, j)),
            ],
            out_specs=pl.BlockSpec((bm, bn), lambda i, j, kk: (i, j)),
            scratch_shapes=[pltpu.VMEM((bm, bn), jnp.float32)],
        ),
        compiler_params=pltpu.CompilerParams(
            dimension_semantics=("parallel", "parallel", "arbitrary")),
    )(x, w_t, b)


# ----------------------------------------------------------------------------
# Flash-style attention (online softmax), heads batched per grid step.
#   q: (BH, T, Dh), k/v: (BH, S, Dh) -> o: (BH, T, Dh)
#   grid = (BH/Hb, T/tq, S/tkv), KV axis is the innermost "arbitrary" axis.
# Scaling is already folded into the q projection weights.
# ----------------------------------------------------------------------------
def _flash_attn_kernel(q_ref, k_ref, v_ref, o_ref, m_ref, l_ref, acc_ref,
                       *, compute_dtype):
    kv_step = pl.program_id(2)

    @pl.when(kv_step == 0)
    def _():
        m_ref[...] = jnp.full_like(m_ref, -jnp.inf)
        l_ref[...] = jnp.zeros_like(l_ref)
        acc_ref[...] = jnp.zeros_like(acc_ref)

    q = q_ref[...].astype(compute_dtype)                      # (Hb, tq, Dh)
    k = k_ref[...].astype(compute_dtype)                      # (Hb, tkv, Dh)
    # QK^T contracting the last dims — no explicit transpose of k.
    s = jnp.einsum("hqd,hkd->hqk", q, k,
                   preferred_element_type=jnp.float32)        # (Hb, tq, tkv)

    m_prev = m_ref[...]
    m_new = jnp.maximum(m_prev, jnp.max(s, axis=-1, keepdims=True))
    alpha = jnp.exp(m_prev - m_new)                           # rescale factor
    p = jnp.exp(s - m_new)                                    # f32 softmax math
    l_ref[...] = alpha * l_ref[...] + jnp.sum(p, axis=-1, keepdims=True)
    pv = jnp.einsum("hqk,hkd->hqd",
                    p.astype(compute_dtype),
                    v_ref[...].astype(compute_dtype),
                    preferred_element_type=jnp.float32)       # (Hb, tq, Dh)
    acc_ref[...] = alpha * acc_ref[...] + pv
    m_ref[...] = m_new

    @pl.when(kv_step == pl.num_programs(2) - 1)
    def _():
        inv_l = pl.reciprocal(l_ref[...], approx=False)
        o_ref[...] = (acc_ref[...] * inv_l).astype(o_ref.dtype)


def pallas_flash_attention(q, k, v, *, compute_dtype=jnp.float32,
                           hb_target=4, tq_target=256, tkv_target=512):
    bh, t, dh = q.shape
    s_len = k.shape[1]
    hb = _pick_tile(bh, hb_target, 1)
    bq = _pick_tile(t, tq_target, 8)
    bkv = _pick_tile(s_len, tkv_target, 8)
    grid = (bh // hb, t // bq, s_len // bkv)
    kern = functools.partial(_flash_attn_kernel, compute_dtype=compute_dtype)
    return pl.pallas_call(
        kern,
        out_shape=jax.ShapeDtypeStruct((bh, t, dh), q.dtype),
        grid_spec=pltpu.PrefetchScalarGridSpec(
            num_scalar_prefetch=0,
            grid=grid,
            in_specs=[
                pl.BlockSpec((hb, bq, dh), lambda h, qt, kt: (h, qt, 0)),
                pl.BlockSpec((hb, bkv, dh), lambda h, qt, kt: (h, kt, 0)),
                pl.BlockSpec((hb, bkv, dh), lambda h, qt, kt: (h, kt, 0)),
            ],
            out_specs=pl.BlockSpec((hb, bq, dh), lambda h, qt, kt: (h, qt, 0)),
            scratch_shapes=[
                pltpu.VMEM((hb, bq, 1), jnp.float32),    # running max
                pltpu.VMEM((hb, bq, 1), jnp.float32),    # running sum
                pltpu.VMEM((hb, bq, dh), jnp.float32),   # output accumulator
            ],
        ),
        compiler_params=pltpu.CompilerParams(
            dimension_semantics=("parallel", "parallel", "arbitrary")),
    )(q, k, v)


# ----------------------------------------------------------------------------
# Parameters: torch-style init + one-time preparation (pre-transpose weights,
# fold head_dim**-0.5 scaling into the q projection).
# ----------------------------------------------------------------------------
def init_params(key, embed_dim, num_heads):
    k1, k2 = jax.random.split(key)
    return {
        "num_heads": num_heads,
        "in_proj_weight": 0.02 * jax.random.normal(
            k1, (3 * embed_dim, embed_dim), jnp.float32),
        "in_proj_bias": jnp.zeros((3 * embed_dim,), jnp.float32),
        "out_proj_weight": 0.02 * jax.random.normal(
            k2, (embed_dim, embed_dim), jnp.float32),
        "out_proj_bias": jnp.zeros((embed_dim,), jnp.float32),
    }


def prepare_params(params):
    num_heads = params["num_heads"]
    w_in = params["in_proj_weight"]                # (3E, E) torch-style
    b_in = params["in_proj_bias"]                  # (3E,)
    embed_dim = w_in.shape[1]
    head_dim = embed_dim // num_heads
    scaling = head_dim ** (-0.5)
    # Fold q-scaling into W_q / b_q: (x W_q^T + b_q) * s == x (W_q * s)^T + b_q * s
    scale_vec = jnp.concatenate([
        jnp.full((embed_dim,), scaling, dtype=w_in.dtype),
        jnp.ones((2 * embed_dim,), dtype=w_in.dtype),
    ])
    w_in_scaled = w_in * scale_vec[:, None]
    b_in_scaled = b_in * scale_vec
    return {
        "num_heads": num_heads,
        "w_in_t": jnp.transpose(w_in_scaled),                      # (E, 3E)
        "b_in": b_in_scaled.reshape(1, 3 * embed_dim),             # (1, 3E)
        "w_out_t": jnp.transpose(params["out_proj_weight"]),       # (E, E)
        "b_out": params["out_proj_bias"].reshape(1, embed_dim),    # (1, E)
    }


# ----------------------------------------------------------------------------
# Forward pass (default-argument path of the PyTorch module).
# ----------------------------------------------------------------------------
def multihead_attention_forward(params, query, key, value, *,
                                compute_dtype=jnp.float32):
    # TODO(synk): key_padding_mask / attn_mask / attn_bias / need_weights / dropout
    #             paths not implemented (any mask must be applied inside the flash
    #             kernel before the online softmax).
    tgt_len, bsz, embed_dim = query.shape
    src_len = key.shape[0]
    num_heads = params["num_heads"]
    head_dim = embed_dim // num_heads

    w_in_t, b_in = params["w_in_t"], params["b_in"]
    E = embed_dim

    if (query is key) and (key is value):
        # qkv_same path: single fused projection (T*B, 3E).
        qkv = pallas_linear(query.reshape(tgt_len * bsz, E), w_in_t, b_in,
                            compute_dtype=compute_dtype)
        q, k, v = qkv[:, :E], qkv[:, E:2 * E], qkv[:, 2 * E:]
    elif key is value:
        # kv_same path: q projection + fused K/V projection.
        q = pallas_linear(query.reshape(tgt_len * bsz, E),
                          w_in_t[:, :E], b_in[:, :E], compute_dtype=compute_dtype)
        kv = pallas_linear(key.reshape(src_len * bsz, E),
                           w_in_t[:, E:], b_in[:, E:], compute_dtype=compute_dtype)
        k, v = kv[:, :E], kv[:, E:]
    else:
        q = pallas_linear(query.reshape(tgt_len * bsz, E),
                          w_in_t[:, :E], b_in[:, :E], compute_dtype=compute_dtype)
        k = pallas_linear(key.reshape(src_len * bsz, E),
                          w_in_t[:, E:2 * E], b_in[:, E:2 * E],
                          compute_dtype=compute_dtype)
        v = pallas_linear(value.reshape(src_len * bsz, E),
                          w_in_t[:, 2 * E:], b_in[:, 2 * E:],
                          compute_dtype=compute_dtype)

    # (T, B*H, Dh) -> (B*H, T, Dh).  Kept as JAX glue: slicing per-head Dh-wide
    # column blocks directly out of the E-wide activations would violate the
    # 128-lane block constraint for head_dim < 128.
    q = q.reshape(tgt_len, bsz * num_heads, head_dim).transpose(1, 0, 2)
    k = k.reshape(src_len, bsz * num_heads, head_dim).transpose(1, 0, 2)
    v = v.reshape(src_len, bsz * num_heads, head_dim).transpose(1, 0, 2)

    attn = pallas_flash_attention(q, k, v, compute_dtype=compute_dtype)  # (BH,T,Dh)
    attn = attn.transpose(1, 0, 2).reshape(tgt_len * bsz, embed_dim)

    out = pallas_linear(attn, params["w_out_t"], params["b_out"],
                        compute_dtype=compute_dtype)
    return out.reshape(tgt_len, bsz, embed_dim), None


# ----------------------------------------------------------------------------
# Pure-JAX reference with the original (torch-style) semantics.
# ----------------------------------------------------------------------------
def reference_forward(raw_params, query, key, value):
    tgt_len, bsz, embed_dim = query.shape
    src_len = key.shape[0]
    num_heads = raw_params["num_heads"]
    head_dim = embed_dim // num_heads
    scaling = head_dim ** (-0.5)
    w_in, b_in = raw_params["in_proj_weight"], raw_params["in_proj_bias"]

    def lin(x, w, b):
        return x @ w.T + b

    q = lin(query, w_in[:embed_dim], b_in[:embed_dim]) * scaling
    k = lin(key, w_in[embed_dim:2 * embed_dim], b_in[embed_dim:2 * embed_dim])
    v = lin(value, w_in[2 * embed_dim:], b_in[2 * embed_dim:])
    q = q.reshape(tgt_len, bsz * num_heads, head_dim).transpose(1, 0, 2)
    k = k.reshape(src_len, bsz * num_heads, head_dim).transpose(1, 0, 2)
    v = v.reshape(src_len, bsz * num_heads, head_dim).transpose(1, 0, 2)
    w = jax.nn.softmax(jnp.einsum("btd,bsd->bts", q, k), axis=-1)
    a = jnp.einsum("bts,bsd->btd", w, v)
    a = a.transpose(1, 0, 2).reshape(tgt_len, bsz, embed_dim)
    return a @ raw_params["out_proj_weight"].T + raw_params["out_proj_bias"]


# ----------------------------------------------------------------------------
if __name__ == "__main__":
    embed_dim, num_heads = 32, 4
    tgt_len, bsz = 8, 2

    root = jax.random.PRNGKey(0)
    kparam, kx = jax.random.split(root)
    raw_params = init_params(kparam, embed_dim, num_heads)
    params = prepare_params(raw_params)

    # Self-attention example: query is key is value (qkv_same fused path).
    x = jax.random.normal(kx, (tgt_len, bsz, embed_dim), jnp.float32)

    attn, attn_weights = multihead_attention_forward(params, x, x, x)
    attn = jax.block_until_ready(attn)

    ref = reference_forward(raw_params, x, x, x)
    np.testing.assert_allclose(np.asarray(attn), np.asarray(ref),
                               rtol=1e-4, atol=1e-4)

    assert attn.shape == (tgt_len, bsz, embed_dim)
    assert attn_weights is None
    print("KERNEL_OK")
</pallas_src>

<mosaic_0001>
module attributes {stable_mosaic.version = 11 : i64} {
  func.func @_linear_kernel(%arg0: i32, %arg1: i32, %arg2: i32, %arg3: memref<16x32xf32, #tpu.memory_space<vmem>>, %arg4: memref<32x96xf32, #tpu.memory_space<vmem>>, %arg5: memref<1x96xf32, #tpu.memory_space<vmem>>, %arg6: memref<16x96xf32, #tpu.memory_space<vmem>>, %arg7: memref<16x96xf32, #tpu.memory_space<vmem>>) attributes {dimension_semantics = [#tpu.dimension_semantics<parallel>, #tpu.dimension_semantics<parallel>, #tpu.dimension_semantics<arbitrary>], iteration_bounds = array<i64: 1, 1, 1>, scalar_prefetch = 0 : i64, scratch_operands = 1 : i64, tpu.core_type = #tpu.core_type<tc>, window_params = [{transform_indices = @transform_0, window_bounds = array<i64: 16, 32>}, {transform_indices = @transform_1, window_bounds = array<i64: 32, 96>}, {transform_indices = @transform_2, window_bounds = array<i64: 1, 96>}, {transform_indices = @transform_3, window_bounds = array<i64: 16, 96>}]} {
    %c0_i32 = arith.constant 0 : i32
    %0 = arith.cmpi eq, %arg2, %c0_i32 : i32
    %1 = arith.extui %0 : i1 to i32
    %c0_i32_0 = arith.constant 0 : i32
    %2 = arith.cmpi ne, %1, %c0_i32_0 : i32
    scf.if %2 {
      %cst_10 = arith.constant 0.000000e+00 : f32
      %12 = vector.broadcast %cst_10 : f32 to vector<16x96xf32>
      %c0_11 = arith.constant 0 : index
      %c0_12 = arith.constant 0 : index
      %13 = vector.load %arg7[%c0_11, %c0_12] : memref<16x96xf32, #tpu.memory_space<vmem>>, vector<16x96xf32>
      tpu.vector_store %arg7[%c0_11, %c0_12], %12 {strides = array<i32>} : memref<16x96xf32, #tpu.memory_space<vmem>>, vector<16x96xf32>,
    } else {
    }
    %c0 = arith.constant 0 : index
    %c0_1 = arith.constant 0 : index
    %3 = vector.load %arg7[%c0, %c0_1] : memref<16x96xf32, #tpu.memory_space<vmem>>, vector<16x96xf32>
    %c0_2 = arith.constant 0 : index
    %c0_3 = arith.constant 0 : index
    %4 = vector.load %arg3[%c0_2, %c0_3] : memref<16x32xf32, #tpu.memory_space<vmem>>, vector<16x32xf32>
    %c0_4 = arith.constant 0 : index
    %c0_5 = arith.constant 0 : index
    %5 = vector.load %arg4[%c0_4, %c0_5] : memref<32x96xf32, #tpu.memory_space<vmem>>, vector<32x96xf32>
    %cst = arith.constant dense<0.000000e+00> : vector<16x96xf32>
    %6 = tpu.matmul %4, %5, %cst {dimension_numbers = #tpu.dot_dimension_numbers<[1], [0], [0], [1], [0, 0, 1, 1], [], []>} : vector<16x32xf32>, vector<32x96xf32>, vector<16x96xf32> -> vector<16x96xf32>
    %7 = arith.addf %3, %6 : vector<16x96xf32>
    %c0_6 = arith.constant 0 : index
    %c0_7 = arith.constant 0 : index
    %8 = vector.load %arg7[%c0_6, %c0_7] : memref<16x96xf32, #tpu.memory_space<vmem>>, vector<16x96xf32>
    tpu.vector_store %arg7[%c0_6, %c0_7], %7 {strides = array<i32>} : memref<16x96xf32, #tpu.memory_space<vmem>>, vector<16x96xf32>,
    %c0_i32_8 = arith.constant 0 : i32
    %9 = arith.cmpi eq, %arg2, %c0_i32_8 : i32
    %10 = arith.extui %9 : i1 to i32
    %c0_i32_9 = arith.constant 0 : i32
    %11 = arith.cmpi ne, %10, %c0_i32_9 : i32
    scf.if %11 {
      %c0_10 = arith.constant 0 : index
      %c0_11 = arith.constant 0 : index
      %12 = vector.load %arg7[%c0_10, %c0_11] : memref<16x96xf32, #tpu.memory_space<vmem>>, vector<16x96xf32>
      %c0_12 = arith.constant 0 : index
      %c0_13 = arith.constant 0 : index
      %13 = vector.load %arg5[%c0_12, %c0_13] : memref<1x96xf32, #tpu.memory_space<vmem>>, vector<1x96xf32>
      %14 = vector.broadcast %13 : vector<1x96xf32> to vector<16x96xf32>
      %15 = arith.addf %12, %14 : vector<16x96xf32>
      %c0_14 = arith.constant 0 : index
      %c0_15 = arith.constant 0 : index
      %16 = vector.load %arg6[%c0_14, %c0_15] : memref<16x96xf32, #tpu.memory_space<vmem>>, vector<16x96xf32>
      tpu.vector_store %arg6[%c0_14, %c0_15], %15 {strides = array<i32>} : memref<16x96xf32, #tpu.memory_space<vmem>>, vector<16x96xf32>,
    } else {
    }
    return
  }
  func.func @transform_0(%arg0: i32, %arg1: i32, %arg2: i32) -> (i32, i32) {
    %c0_i32 = arith.constant 0 : i32
    return %arg0, %arg2 : i32, i32
  }
  func.func @transform_1(%arg0: i32, %arg1: i32, %arg2: i32) -> (i32, i32) {
    %c0_i32 = arith.constant 0 : i32
    return %arg2, %arg1 : i32, i32
  }
  func.func @transform_2(%arg0: i32, %arg1: i32, %arg2: i32) -> (i32, i32) {
    %c0_i32 = arith.constant 0 : i32
    %c0_i32_0 = arith.constant 0 : i32
    return %c0_i32, %arg1 : i32, i32
  }
  func.func @transform_3(%arg0: i32, %arg1: i32, %arg2: i32) -> (i32, i32) {
    %c0_i32 = arith.constant 0 : i32
    return %arg0, %arg1 : i32, i32
  }
}

</mosaic_0001>

<bundles_post_ra>
// kernel: tpu_custom_call.1
= control target key start
LH: loop header
LB: loop body
LE: loop exit
PB: predicated region body
PF: predicated region fallthrough
CT: control target
= control target key end

     0   :  { %8 = vsyncpa [#allocation4], 0  ;;  %s365_s0 = inlined_call_operand.hbm [shape: f32[16,32], index: 0, kind: input, shape index: {}]   ;;  %s366_s1 = inlined_call_operand.hbm [shape: f32[32,96], index: 1, kind: input, shape index: {}]   ;;  %s367_s2 = inlined_call_operand.vmem [shape: f32[1,96], index: 2, kind: input, shape index: {}]   ;;  %s368_s3 = inlined_call_operand.hbm [shape: f32[16,96], index: 3, kind: output, shape index: {}]  }
   0x1   :  { %9 = vsyncpa [#allocation7], 0 }
   0x2   :  { %10 = vsyncpa [#allocation5], 0  ;;  %s285_s12 = smov [#allocation3]   ;;  %s213_s16 = scalar_lea.hbm %s365_s0, 256 }
   0x3   :  { %s16_s13 = sshll.u32 %s285_s12, 4  ;;  %p214_p0 = scmp.ne.s32.totalorder %s365_s0, %s213_s16  ;;  %s17_s13 = int_to_ptr.vmem [resolvable:$true] %s16_s13 }
   0x4   :  { %p217_p1 = scmp.lt.u32.totalorder %s213_s16, %s365_s0 }
   0x6   :  { %p219_p2 = pnand %p217_p1, %p214_p0 }
   0x8   :  { %222 = shalt.err (!%p219_p2)
}
   0x9   :  { %s223_s21 = scalar_lea.vmem %s17_s13, 256  ;;  %p228_p4 = scmp.lt.s32.totalorder %s17_s13, %s17_s13 }
   0xa   :  { %p224_p3 = scmp.ne.s32.totalorder %s17_s13, %s223_s21  ;;  %p229_p5 = scmp.lt.s32.totalorder %s223_s21, %s223_s21 }
   0xc   :  { %p230_p6 = por %p229_p5, %p228_p4 }
   0xe   :  { %p231_p7 = pnand %p230_p6, %p224_p3 }
  0x10   :  { %234 = shalt.err (!%p231_p7)
}
  0x11   :  { %s286_s22 = smov 128   ;;  %s287_s23 = smov 8  }
  0x12   :  { %22 = dma.hbm_to_vmem [thread:$0]  %s365_s0, 256, %s17_s13, [#allocation4], %s286_s22, %s286_s22, %s287_s23  }
  0x13   :  { %s288_s26 = smov [#allocation6]   ;;  %s235_s30 = scalar_lea.hbm %s366_s1, 512 }
  0x14   :  { %s28_s27 = sshll.u32 %s288_s26, 4  ;;  %p236_p8 = scmp.ne.s32.totalorder %s366_s1, %s235_s30  ;;  %s29_s27 = int_to_ptr.vmem [resolvable:$true] %s28_s27 }
  0x15   :  { %p239_p9 = scmp.lt.u32.totalorder %s235_s30, %s366_s1 }
  0x17   :  { %p241_p10 = pnand %p239_p9, %p236_p8 }
  0x19   :  { %244 = shalt.err (!%p241_p10)
}
  0x1a   :  { %s245_s8 = scalar_lea.vmem %s29_s27, 512  ;;  %p250_p12 = scmp.lt.s32.totalorder %s29_s27, %s29_s27 }
  0x1b   :  { %p246_p11 = scmp.ne.s32.totalorder %s29_s27, %s245_s8  ;;  %p251_p13 = scmp.lt.s32.totalorder %s245_s8, %s245_s8 }
  0x1d   :  { %p252_p0 = por %p251_p13, %p250_p12 }
  0x1f   :  { %p253_p1 = pnand %p252_p0, %p246_p11 }
  0x21   :  { %256 = shalt.err (!%p253_p1)
}
  0x22   :  { %34 = dma.hbm_to_vmem [thread:$0]  %s366_s1, 512, %s29_s27, [#allocation7], %s286_s22, %s286_s22, %s287_s23  }
  0x23   :  { %279 = dma.done.wait [#allocation4], 256  }
  0x24   :  { %280 = vsyncadd [#allocation4], 4294967040 }
  0x25   :  { %281 = dma.done.wait [#allocation7], 512  }
  0x26   :  { %282 = vsyncadd [#allocation7], 4294966784  ;;  %vm47_vm0 = vcmask 785408   ;;  %v289_v0 = vmov 0.0   ;;  %vm58_vm1 = vcmask 261120   ;;  %v54_v1 = vld [vmem:[#allocation6] sm:$0xff] }
  0x27   :  { %49 = vst.msk [vmem:[#allocation2 + $0x8] sm:$0xff] %vm47_vm0, %v289_v0  ;;  %48 = vst.msk [vmem:[#allocation2] sm:$0xff] %vm47_vm0, %v289_v0  ;;  %v55_v2 = vld [vmem:[#allocation6 + $0x8] sm:$0xff]  ;;  %v56_v3 = vld [vmem:[#allocation6 + $0x10] sm:$0xff]  ;;  %s290_s11 = smov [#allocation8]  }
  0x28   :  { %v199_v4 = vpack.c.bf16 %v55_v2, %v54_v1  ;;  %v57_v5 = vld [vmem:[#allocation6 + $0x18] sm:$0xff]  ;;  %v52_v6 = vld [vmem:[#allocation3] sm:$0xff]  ;;  %v181_v15 = vld [vmem:[%s367_s2] ss:$0 sm:$0xff]  ;;  %s166_s12 = sshll.u32 %s290_s11, 4  ;;  %s167_s12 = int_to_ptr.vmem [resolvable:$true] %s166_s12 }
  0x29   :  { %v203_v7 = vpack.c.bf16 %v57_v5, %v56_v3  ;;  %196 = vmatprep.mubr.msk.f32.mxu0 %vm58_vm1, %v52_v6  ;;  %v53_v8 = vld [vmem:[#allocation3 + $0x8] sm:$0xff]  ;;  %s257_s13 = scalar_lea.vmem %s167_s12, 256  ;;  %p262_p3 = scmp.lt.s32.totalorder %s167_s12, %s167_s12 }
  0x2a   :  { %200 = vmatprep.subr.bf16.mxu0 %v199_v4  ;;  %p258_p2 = scmp.ne.s32.totalorder %s167_s12, %s257_s13  ;;  %p263_p4 = scmp.lt.s32.totalorder %s257_s13, %s257_s13 }
  0x2b   :  { %202 = vmatpush3.bf16.msra.mxu0 %v199_v4 }
  0x2c   :  { %204 = vmatprep.subr.bf16.mxu0 %v203_v7  ;;  %p264_p5 = por %p263_p4, %p262_p3 }
  0x2e   :  { %v51_v9 = vld [vmem:[#allocation2 + $0x8] sm:$0xff]  ;;  %v50_v10 = vld [vmem:[#allocation2] sm:$0xff]  ;;  %p265_p6 = pnand %p264_p5, %p258_p2 }
  0x2f   :  { %206 = vmatpush3.bf16.msra.mxu0 %v203_v7 }
  0x32   :  { %197 = vmatmul.mubr.msk.f32.vlgmr.msra.gmra.mrb[0].mxu0 %vm58_vm1, %v53_v8 }
 0x105   :  { %v198_v11 = vpop.f32.mrb[0].mxu0 }
 0x106   :  { %v141_v12 = vadd.f32 %v198_v11, %v51_v9  ;;  %v131_v13 = vpop.f32.mrb[1].mxu0 }
 0x107   :  { %v140_v14 = vadd.f32 %v131_v13, %v50_v10 }
 0x108   :  { %144 = vst.msk [vmem:[#allocation2 + $0x8] sm:$0xff] %vm47_vm0, %v141_v12 }
 0x109   :  { %143 = vst.msk [vmem:[#allocation2] sm:$0xff] %vm47_vm0, %v140_v14 }
 0x10f   :  { %v149_v16 = vld [vmem:[#allocation2 + $0x8] sm:$0xff] }
 0x110   :  { %v148_v17 = vld [vmem:[#allocation2] sm:$0xff]  ;;  %v158_v18 = vadd.f32 %v181_v15, %v149_v16 }
 0x111   :  { %v157_v19 = vadd.f32 %v181_v15, %v148_v17 }
 0x112   :  { %160 = vst.msk [vmem:[#allocation8 + $0x8] sm:$0xff] %vm47_vm0, %v158_v18 }
 0x113   :  { %159 = vst.msk [vmem:[#allocation8] sm:$0xff] %vm47_vm0, %v157_v19 }
 0x114   :  { %268 = shalt.err (!%p265_p6)
}
 0x115   :  { %s269_s15 = scalar_lea.hbm %s368_s3, 256 }
 0x116   :  { %p270_p7 = scmp.ne.s32.totalorder %s368_s3, %s269_s15  ;;  %p273_p8 = scmp.lt.u32.totalorder %s269_s15, %s368_s3 }
 0x118   :  { %p275_p9 = pnand %p273_p8, %p270_p7 }
 0x11a   :  { %278 = shalt.err (!%p275_p9)
}
 0x11b   :  { %172 = dma.vmem_to_hbm [thread:$0]  %s167_s12, 256, %s368_s3, [#allocation5], %s286_s22, %s286_s22, %s287_s23  }
 0x11c   :  { %283 = dma.done.wait [#allocation5], 256  }
 0x11d   :  { %284 = vsyncadd [#allocation5], 4294967040 }
 0x11e   :  { %176 = vsyncpa [#allocation4], 1 }
 0x11f   :  { %177 = vsyncpa [#allocation7], 1 }
 0x120   :  { %178 = vsyncpa [#allocation5], 1 }

</bundles_post_ra>
